<compile_context>
chip_gen: v5e
topology: v5e:2x2
jax: 0.10.0
libtpu: 0.0.40
codegen_flags: <defaults>
</compile_context>

<pallas_src>
import functools

import numpy as np
import jax
import jax.numpy as jnp
from jax.experimental import pallas as pl
from jax.experimental.pallas import tpu as pltpu


def _round_up(x, m):
    return (x + m - 1) // m * m


def _vmem_usable_bytes():
    """Per-generation usable VMEM target for this kernel (conservative fallback)."""
    cap = 64 * 1024 * 1024  # v7x per-TensorCore physical VMEM (smallest generation)
    try:
        info = pltpu.get_tpu_info()
        cap = int(getattr(info, "vmem_capacity_bytes", cap) or cap)
    except Exception:
        pass
    # 16 MiB headroom for Mosaic-internal scratch; cap at 100 MiB (v5e/v6e have
    # 128 MiB physical VMEM, v7x only 64 MiB -> usable becomes 48 MiB there).
    return max(24 << 20, min(cap - (16 << 20), 100 << 20))


def _choose_plan(Vp, Ep, budget_bytes):
    """Pick (adj_resident, row_tile) so a worst-case (double-buffered) estimate fits."""
    bf16 = 2
    fixed = 2 * (Vp * Ep + Ep * Ep) * bf16    # W1 + W2, worst case double-buffered
    fixed += 2 * 2 * Ep * 4                   # b1, b2 (f32)
    fixed += Vp * Ep * bf16                   # t2 scratch (single copy)

    def tile_cost(tm, resident):
        c = 2 * tm * Ep * 4                   # output tile, double-buffered f32
        c += (2 * Vp * Vp * bf16) if resident else (2 * tm * Vp * bf16)
        return c

    cands = [t for t in (1024, 512, 256, 128) if Vp % t == 0]
    # Prefer adj-resident (halves the dominant HBM stream), then the largest tile.
    for resident in (True, False):
        for tm in cands:
            if fixed + tile_cost(tm, resident) <= budget_bytes:
                return resident, tm
    # TODO(synk): K-tiling over Vp needed here; until then fall back to the
    # smallest row tile and let the vmem limit absorb it.
    return False, 128


# ----------------------------------------------------------------------------
# Fused 2-layer GCN kernel (two-pass grid, shared t2 scratch).
# ----------------------------------------------------------------------------
def gcn_fused_kernel(adj_ref, w1_ref, b1_ref, w2_ref, b2_ref, out_ref, t2_ref,
                     *, tm, adj_resident):
    p = pl.program_id(0)  # 0: t2 = relu(adj@W1 + b1) @ W2 ; 1: out = adj@t2 + b2
    i = pl.program_id(1)  # row-tile index
    row0 = pl.multiple_of(i * tm, tm)

    def adj_rows():
        if adj_resident:                     # full adj resident in VMEM: slice rows
            return adj_ref[pl.ds(row0, tm), :]
        return adj_ref[...]                  # row-tiled (pipelined) adj block

    @pl.when(p == 0)
    def _():
        # Layer 1 (x == I, so support1 == W1): h1 = relu(adj_rows @ W1 + b1) in f32.
        s1 = jnp.dot(adj_rows(), w1_ref[...], preferred_element_type=jnp.float32)
        h1 = jnp.maximum(s1 + b1_ref[...], 0.0)          # bias + ReLU in f32
        # Layer-2 "support" for these rows: t2_rows = h1 @ W2 (bf16 MXU operands).
        t2 = jnp.dot(h1.astype(jnp.bfloat16), w2_ref[...],
                     preferred_element_type=jnp.float32)
        t2_ref[pl.ds(row0, tm), :] = t2.astype(jnp.bfloat16)
        # NOTE: out_ref is deliberately NOT written in pass 0.  out_specs maps all
        # pass-0 steps to output block (0, 0), which is fully overwritten at
        # (p=1, i=0) before it is ever flushed, so the output is written to HBM
        # exactly once (pass 1).

    @pl.when(p == 1)
    def _():
        out_ref[...] = (
            jnp.dot(adj_rows(), t2_ref[...], preferred_element_type=jnp.float32)
            + b2_ref[...]
        )


# ----------------------------------------------------------------------------
# Wrapper: pad/cast preparation (hoistable) + pallas_call
# ----------------------------------------------------------------------------
def gcn_prepare(adj, w1, b1, w2, b2):
    """Cast to bf16 first, then zero-pad to lane-dense (multiple-of-128) shapes.

    Zero padding is exact for this computation (padded adj rows/cols are zero, so
    padded t2 rows never contaminate valid output rows).  For repeated inference,
    call this once and reuse the result with gcn_forward_padded().
    """
    V = adj.shape[0]
    E = w1.shape[1]
    Vp = _round_up(V, 128)
    Ep = _round_up(E, 128)
    adj_p = jnp.pad(adj.astype(jnp.bfloat16), ((0, Vp - V), (0, Vp - V)))
    w1_p = jnp.pad(w1.astype(jnp.bfloat16), ((0, Vp - V), (0, Ep - E)))
    w2_p = jnp.pad(w2.astype(jnp.bfloat16), ((0, Ep - E), (0, Ep - E)))
    b1_p = jnp.pad(jnp.reshape(b1, (1, E)).astype(jnp.float32), ((0, 0), (0, Ep - E)))
    b2_p = jnp.pad(jnp.reshape(b2, (1, E)).astype(jnp.float32), ((0, 0), (0, Ep - E)))
    return (adj_p, w1_p, b1_p, w2_p, b2_p), (V, E)


def gcn_forward_padded(adj_p, w1_p, b1_p, w2_p, b2_p, *, row_tile=None):
    Vp = adj_p.shape[0]
    Ep = w1_p.shape[1]

    usable_vmem = _vmem_usable_bytes()
    adj_resident, tm = _choose_plan(Vp, Ep, usable_vmem)
    if row_tile is not None:
        assert Vp % row_tile == 0, "row_tile must divide padded V"
        tm = row_tile
    num_tiles = Vp // tm

    flops = 2 * Vp * Vp * Ep          # adj @ W1
    flops += 2 * Vp * Ep * Ep         # h1  @ W2
    flops += 2 * Vp * Vp * Ep         # adj @ t2
    adj_reads = 1 if adj_resident else 2
    bytes_accessed = (
        adj_reads * Vp * Vp * 2       # adj (bf16): once if resident, else per pass
        + Vp * Ep * 2 + Ep * Ep * 2   # W1, W2 (bf16)
        + 2 * Ep * 4                  # biases (f32)
        + Vp * Ep * 4                 # output (f32), written exactly once
    )

    def build(single_buffer_residents):
        def resident_spec(shape, index_map):
            # Constant-index blocks don't need double buffering; Buffered(1)
            # frees VMEM headroom (most valuable on v7x's 64 MiB).
            if single_buffer_residents:
                return pl.BlockSpec(shape, index_map, pipeline_mode=pl.Buffered(1))
            return pl.BlockSpec(shape, index_map)

        if adj_resident:
            adj_spec = resident_spec((Vp, Vp), lambda p, i: (0, 0))   # streamed once
        else:
            adj_spec = pl.BlockSpec((tm, Vp), lambda p, i: (i, 0))    # pipelined rows

        grid_spec = pltpu.PrefetchScalarGridSpec(
            num_scalar_prefetch=0,
            grid=(2, num_tiles),      # (pass, row tile); pass must be the outer axis
            in_specs=[
                adj_spec,
                resident_spec((Vp, Ep), lambda p, i: (0, 0)),   # W1 (resident)
                resident_spec((1, Ep), lambda p, i: (0, 0)),    # b1
                resident_spec((Ep, Ep), lambda p, i: (0, 0)),   # W2 (resident)
                resident_spec((1, Ep), lambda p, i: (0, 0)),    # b2
            ],
            # Pass 0 parks on block (0, 0) without writing it; pass 1 writes each
            # row block exactly once -> single output HBM stream.
            out_specs=pl.BlockSpec((tm, Ep), lambda p, i: (i * p, 0)),
            scratch_shapes=[pltpu.VMEM((Vp, Ep), jnp.bfloat16)],   # t2
        )
        return pl.pallas_call(
            functools.partial(gcn_fused_kernel, tm=tm, adj_resident=adj_resident),
            out_shape=jax.ShapeDtypeStruct((Vp, Ep), jnp.float32),
            grid_spec=grid_spec,
            compiler_params=pltpu.CompilerParams(
                # Row axis feeds a scratch shared across tiles -> cannot be
                # "parallel"; pass axis is a true sequential dependency.
                dimension_semantics=("arbitrary", "arbitrary"),
                vmem_limit_bytes=int(usable_vmem),
            ),
            cost_estimate=pl.CostEstimate(
                flops=flops, transcendentals=0, bytes_accessed=bytes_accessed),
        )

    args = (adj_p, w1_p, b1_p, w2_p, b2_p)
    try:
        out_p = jax.block_until_ready(build(True)(*args))
    except Exception:
        # pipeline_mode=pl.Buffered(1) unsupported on this jax version: fall back
        # to default double buffering (costs VMEM headroom only, not correctness).
        out_p = jax.block_until_ready(build(False)(*args))
    return out_p


def gcn_forward(adj, w1, b1, w2, b2, *, row_tile=None):
    """Fused GCN forward.  adj: (V, V) row-normalized f32; w1: (V, E); w2: (E, E)."""
    padded, (V, E) = gcn_prepare(adj, w1, b1, w2, b2)
    out_p = gcn_forward_padded(*padded, row_tile=row_tile)
    return out_p[:V, :E]


# ----------------------------------------------------------------------------
# Deterministic parameter / adjacency construction (mirrors GCN.__init__)
# ----------------------------------------------------------------------------
def row_normalize(mx):
    """Row-normalize matrix (numpy), matching GCN.normalize (zero rows -> zero)."""
    rowsum = mx.sum(axis=1)
    r_inv = np.zeros_like(rowsum)
    nz = rowsum != 0
    r_inv[nz] = 1.0 / rowsum[nz]
    return (mx * r_inv[:, None]).astype(np.float32)


def build_params(voc_size, emb_dim, key):
    k_adj, k_w1, k_b1, k_w2, k_b2 = jax.random.split(key, 5)

    # Synthetic binary adjacency, then adj = normalize(adj + I)
    adj_raw = (jax.random.uniform(k_adj, (voc_size, voc_size)) > 0.8).astype(np.float32)
    adj_np = row_normalize(np.asarray(adj_raw) + np.eye(voc_size, dtype=np.float32))

    # GraphConvolution init: uniform(-stdv, stdv), stdv = 1/sqrt(out_features)
    stdv1 = 1.0 / np.sqrt(emb_dim)
    w1 = jax.random.uniform(k_w1, (voc_size, emb_dim), minval=-stdv1, maxval=stdv1)
    b1 = jax.random.uniform(k_b1, (1, emb_dim), minval=-stdv1, maxval=stdv1)
    stdv2 = 1.0 / np.sqrt(emb_dim)
    w2 = jax.random.uniform(k_w2, (emb_dim, emb_dim), minval=-stdv2, maxval=stdv2)
    b2 = jax.random.uniform(k_b2, (1, emb_dim), minval=-stdv2, maxval=stdv2)

    return (jnp.asarray(adj_np, jnp.float32),
            w1.astype(jnp.float32), b1.astype(jnp.float32),
            w2.astype(jnp.float32), b2.astype(jnp.float32))


# ----------------------------------------------------------------------------
# References
# ----------------------------------------------------------------------------
def reference_matching(adj, w1, b1, w2, b2):
    """Pure-JAX reference with the kernel's exact numerics (bf16 MXU operands, f32 acc)."""
    adj_b = adj.astype(jnp.bfloat16)
    w1_b = w1.astype(jnp.bfloat16)
    w2_b = w2.astype(jnp.bfloat16)
    s1 = jnp.dot(adj_b, w1_b, preferred_element_type=jnp.float32)
    h1 = jnp.maximum(s1 + b1, 0.0)
    t2 = jnp.dot(h1.astype(jnp.bfloat16), w2_b,
                 preferred_element_type=jnp.float32).astype(jnp.bfloat16)
    return jnp.dot(adj_b, t2, preferred_element_type=jnp.float32) + b2


def reference_f32(adj, w1, b1, w2, b2):
    """Full-f32 numpy reference (PyTorch-equivalent semantics, eval mode)."""
    h1 = np.maximum(adj @ w1 + b1, 0.0)
    return adj @ (h1 @ w2) + b2


if __name__ == "__main__":
    voc_size, emb_dim = 64, 32
    key = jax.random.PRNGKey(0)
    adj, w1, b1, w2, b2 = build_params(voc_size, emb_dim, key)

    out = gcn_forward(adj, w1, b1, w2, b2)
    out = jax.block_until_ready(out)
    assert out.shape == (voc_size, emb_dim)

    # Tight check vs. a pure-JAX reference with identical bf16/f32 numerics.
    ref_b = jax.block_until_ready(reference_matching(adj, w1, b1, w2, b2))
    np.testing.assert_allclose(np.asarray(out), np.asarray(ref_b), rtol=1e-3, atol=1e-4)

    # Loose check vs. full-f32 PyTorch-equivalent semantics (bf16 operands only
    # introduce ~1e-3 relative error at these magnitudes).
    ref_f = reference_f32(np.asarray(adj), np.asarray(w1), np.asarray(b1),
                          np.asarray(w2), np.asarray(b2))
    np.testing.assert_allclose(np.asarray(out), ref_f, rtol=5e-2, atol=5e-3)

    print("KERNEL_OK")
</pallas_src>

<mosaic_0001>
module attributes {stable_mosaic.version = 11 : i64} {
  func.func @gcn_fused_kernel(%arg0: i32, %arg1: i32, %arg2: memref<128x128xbf16, #tpu.memory_space<vmem>>, %arg3: memref<128x128xbf16, #tpu.memory_space<vmem>>, %arg4: memref<1x128xf32, #tpu.memory_space<vmem>>, %arg5: memref<128x128xbf16, #tpu.memory_space<vmem>>, %arg6: memref<1x128xf32, #tpu.memory_space<vmem>>, %arg7: memref<128x128xf32, #tpu.memory_space<vmem>>, %arg8: memref<128x128xbf16, #tpu.memory_space<vmem>>) attributes {dimension_semantics = [#tpu.dimension_semantics<arbitrary>, #tpu.dimension_semantics<arbitrary>], iteration_bounds = array<i64: 2, 1>, scalar_prefetch = 0 : i64, scratch_operands = 1 : i64, tpu.core_type = #tpu.core_type<tc>, window_params = [{pipeline_mode = #tpu.pipeline_mode<synchronous>, transform_indices = @transform_0, window_bounds = array<i64: 128, 128>}, {pipeline_mode = #tpu.pipeline_mode<synchronous>, transform_indices = @transform_1, window_bounds = array<i64: 128, 128>}, {pipeline_mode = #tpu.pipeline_mode<synchronous>, transform_indices = @transform_2, window_bounds = array<i64: 1, 128>}, {pipeline_mode = #tpu.pipeline_mode<synchronous>, transform_indices = @transform_3, window_bounds = array<i64: 128, 128>}, {pipeline_mode = #tpu.pipeline_mode<synchronous>, transform_indices = @transform_4, window_bounds = array<i64: 1, 128>}, {transform_indices = @transform_5, window_bounds = array<i64: 128, 128>}]} {
    %c128_i32 = arith.constant 128 : i32
    %0 = arith.muli %arg1, %c128_i32 : i32
    %1 = tpu.assume_multiple %0, 128 : i32
    %c0_i32 = arith.constant 0 : i32
    %2 = arith.cmpi eq, %arg0, %c0_i32 : i32
    %3 = arith.extui %2 : i1 to i32
    %c0_i32_0 = arith.constant 0 : i32
    %4 = arith.cmpi ne, %3, %c0_i32_0 : i32
    scf.if %4 {
      %8 = arith.index_cast %1 : i32 to index
      %c0 = arith.constant 0 : index
      %9 = vector.load %arg2[%8, %c0] : memref<128x128xbf16, #tpu.memory_space<vmem>>, vector<128x128xbf16>
      %c0_2 = arith.constant 0 : index
      %c0_3 = arith.constant 0 : index
      %10 = vector.load %arg3[%c0_2, %c0_3] : memref<128x128xbf16, #tpu.memory_space<vmem>>, vector<128x128xbf16>
      %cst = arith.constant dense<0.000000e+00> : vector<128x128xf32>
      %11 = tpu.matmul %9, %10, %cst {dimension_numbers = #tpu.dot_dimension_numbers<[1], [0], [0], [1], [0, 0, 1, 1], [], []>} : vector<128x128xbf16>, vector<128x128xbf16>, vector<128x128xf32> -> vector<128x128xf32>
      %c0_4 = arith.constant 0 : index
      %c0_5 = arith.constant 0 : index
      %12 = vector.load %arg4[%c0_4, %c0_5] : memref<1x128xf32, #tpu.memory_space<vmem>>, vector<1x128xf32>
      %13 = vector.broadcast %12 : vector<1x128xf32> to vector<128x128xf32>
      %14 = arith.addf %11, %13 : vector<128x128xf32>
      %cst_6 = arith.constant 0.000000e+00 : f32
      %15 = vector.broadcast %cst_6 : f32 to vector<128x128xf32>
      %16 = arith.maximumf %14, %15 : vector<128x128xf32>
      %17 = arith.truncf %16 : vector<128x128xf32> to vector<128x128xbf16>
      %c0_7 = arith.constant 0 : index
      %c0_8 = arith.constant 0 : index
      %18 = vector.load %arg5[%c0_7, %c0_8] : memref<128x128xbf16, #tpu.memory_space<vmem>>, vector<128x128xbf16>
      %cst_9 = arith.constant dense<0.000000e+00> : vector<128x128xf32>
      %19 = tpu.matmul %17, %18, %cst_9 {dimension_numbers = #tpu.dot_dimension_numbers<[1], [0], [0], [1], [0, 0, 1, 1], [], []>} : vector<128x128xbf16>, vector<128x128xbf16>, vector<128x128xf32> -> vector<128x128xf32>
      %20 = arith.truncf %19 : vector<128x128xf32> to vector<128x128xbf16>
      %21 = arith.index_cast %1 : i32 to index
      %c0_10 = arith.constant 0 : index
      %22 = vector.load %arg8[%21, %c0_10] : memref<128x128xbf16, #tpu.memory_space<vmem>>, vector<128x128xbf16>
      tpu.vector_store %arg8[%21, %c0_10], %20 {strides = array<i32>} : memref<128x128xbf16, #tpu.memory_space<vmem>>, vector<128x128xbf16>,
    } else {
    }
    %c1_i32 = arith.constant 1 : i32
    %5 = arith.cmpi eq, %arg0, %c1_i32 : i32
    %6 = arith.extui %5 : i1 to i32
    %c0_i32_1 = arith.constant 0 : i32
    %7 = arith.cmpi ne, %6, %c0_i32_1 : i32
    scf.if %7 {
      %8 = arith.index_cast %1 : i32 to index
      %c0 = arith.constant 0 : index
      %9 = vector.load %arg2[%8, %c0] : memref<128x128xbf16, #tpu.memory_space<vmem>>, vector<128x128xbf16>
      %c0_2 = arith.constant 0 : index
      %c0_3 = arith.constant 0 : index
      %10 = vector.load %arg8[%c0_2, %c0_3] : memref<128x128xbf16, #tpu.memory_space<vmem>>, vector<128x128xbf16>
      %cst = arith.constant dense<0.000000e+00> : vector<128x128xf32>
      %11 = tpu.matmul %9, %10, %cst {dimension_numbers = #tpu.dot_dimension_numbers<[1], [0], [0], [1], [0, 0, 1, 1], [], []>} : vector<128x128xbf16>, vector<128x128xbf16>, vector<128x128xf32> -> vector<128x128xf32>
      %c0_4 = arith.constant 0 : index
      %c0_5 = arith.constant 0 : index
      %12 = vector.load %arg6[%c0_4, %c0_5] : memref<1x128xf32, #tpu.memory_space<vmem>>, vector<1x128xf32>
      %13 = vector.broadcast %12 : vector<1x128xf32> to vector<128x128xf32>
      %14 = arith.addf %11, %13 : vector<128x128xf32>
      %c0_6 = arith.constant 0 : index
      %c0_7 = arith.constant 0 : index
      %15 = vector.load %arg7[%c0_6, %c0_7] : memref<128x128xf32, #tpu.memory_space<vmem>>, vector<128x128xf32>
      tpu.vector_store %arg7[%c0_6, %c0_7], %14 {strides = array<i32>} : memref<128x128xf32, #tpu.memory_space<vmem>>, vector<128x128xf32>,
    } else {
    }
    return
  }
  func.func @transform_0(%arg0: i32, %arg1: i32) -> (i32, i32) {
    %c0_i32 = arith.constant 0 : i32
    %c0_i32_0 = arith.constant 0 : i32
    %c0_i32_1 = arith.constant 0 : i32
    return %c0_i32, %c0_i32_0 : i32, i32
  }
  func.func @transform_1(%arg0: i32, %arg1: i32) -> (i32, i32) {
    %c0_i32 = arith.constant 0 : i32
    %c0_i32_0 = arith.constant 0 : i32
    %c0_i32_1 = arith.constant 0 : i32
    return %c0_i32, %c0_i32_0 : i32, i32
  }
  func.func @transform_2(%arg0: i32, %arg1: i32) -> (i32, i32) {
    %c0_i32 = arith.constant 0 : i32
    %c0_i32_0 = arith.constant 0 : i32
    %c0_i32_1 = arith.constant 0 : i32
    return %c0_i32, %c0_i32_0 : i32, i32
  }
  func.func @transform_3(%arg0: i32, %arg1: i32) -> (i32, i32) {
    %c0_i32 = arith.constant 0 : i32
    %c0_i32_0 = arith.constant 0 : i32
    %c0_i32_1 = arith.constant 0 : i32
    return %c0_i32, %c0_i32_0 : i32, i32
  }
  func.func @transform_4(%arg0: i32, %arg1: i32) -> (i32, i32) {
    %c0_i32 = arith.constant 0 : i32
    %c0_i32_0 = arith.constant 0 : i32
    %c0_i32_1 = arith.constant 0 : i32
    return %c0_i32, %c0_i32_0 : i32, i32
  }
  func.func @transform_5(%arg0: i32, %arg1: i32) -> (i32, i32) {
    %0 = arith.muli %arg1, %arg0 : i32
    %c0_i32 = arith.constant 0 : i32
    %c0_i32_0 = arith.constant 0 : i32
    return %0, %c0_i32 : i32, i32
  }
}

module attributes {stable_mosaic.version = 11 : i64} {
  func.func @gcn_fused_kernel(%arg0: i32, %arg1: i32, %arg2: memref<128x128xbf16, #tpu.memory_space<vmem>>, %arg3: memref<128x128xbf16, #tpu.memory_space<vmem>>, %arg4: memref<1x128xf32, #tpu.memory_space<vmem>>, %arg5: memref<128x128xbf16, #tpu.memory_space<vmem>>, %arg6: memref<1x128xf32, #tpu.memory_space<vmem>>, %arg7: memref<128x128xf32, #tpu.memory_space<vmem>>, %arg8: memref<128x128xbf16, #tpu.memory_space<vmem>>) attributes {dimension_semantics = [#tpu.dimension_semantics<arbitrary>, #tpu.dimension_semantics<arbitrary>], iteration_bounds = array<i64: 2, 1>, scalar_prefetch = 0 : i64, scratch_operands = 1 : i64, tpu.core_type = #tpu.core_type<tc>, window_params = [{pipeline_mode = #tpu.pipeline_mode<synchronous>, transform_indices = @transform_0, window_bounds = array<i64: 128, 128>}, {pipeline_mode = #tpu.pipeline_mode<synchronous>, transform_indices = @transform_1, window_bounds = array<i64: 128, 128>}, {pipeline_mode = #tpu.pipeline_mode<synchronous>, transform_indices = @transform_2, window_bounds = array<i64: 1, 128>}, {pipeline_mode = #tpu.pipeline_mode<synchronous>, transform_indices = @transform_3, window_bounds = array<i64: 128, 128>}, {pipeline_mode = #tpu.pipeline_mode<synchronous>, transform_indices = @transform_4, window_bounds = array<i64: 1, 128>}, {transform_indices = @transform_5, window_bounds = array<i64: 128, 128>}]} {
    %c128_i32 = arith.constant 128 : i32
    %0 = arith.muli %arg1, %c128_i32 : i32
    %1 = tpu.assume_multiple %0, 128 : i32
    %c0_i32 = arith.constant 0 : i32
    %2 = arith.cmpi eq, %arg0, %c0_i32 : i32
    %3 = arith.extui %2 : i1 to i32
    %c0_i32_0 = arith.constant 0 : i32
    %4 = arith.cmpi ne, %3, %c0_i32_0 : i32
    scf.if %4 {
      %8 = arith.index_cast %1 : i32 to index
      %c0 = arith.constant 0 : index
      %9 = vector.load %arg2[%8, %c0] : memref<128x128xbf16, #tpu.memory_space<vmem>>, vector<128x128xbf16>
      %c0_2 = arith.constant 0 : index
      %c0_3 = arith.constant 0 : index
      %10 = vector.load %arg3[%c0_2, %c0_3] : memref<128x128xbf16, #tpu.memory_space<vmem>>, vector<128x128xbf16>
      %cst = arith.constant dense<0.000000e+00> : vector<128x128xf32>
      %11 = tpu.matmul %9, %10, %cst {dimension_numbers = #tpu.dot_dimension_numbers<[1], [0], [0], [1], [0, 0, 1, 1], [], []>} : vector<128x128xbf16>, vector<128x128xbf16>, vector<128x128xf32> -> vector<128x128xf32>
      %c0_4 = arith.constant 0 : index
      %c0_5 = arith.constant 0 : index
      %12 = vector.load %arg4[%c0_4, %c0_5] : memref<1x128xf32, #tpu.memory_space<vmem>>, vector<1x128xf32>
      %13 = vector.broadcast %12 : vector<1x128xf32> to vector<128x128xf32>
      %14 = arith.addf %11, %13 : vector<128x128xf32>
      %cst_6 = arith.constant 0.000000e+00 : f32
      %15 = vector.broadcast %cst_6 : f32 to vector<128x128xf32>
      %16 = arith.maximumf %14, %15 : vector<128x128xf32>
      %17 = arith.truncf %16 : vector<128x128xf32> to vector<128x128xbf16>
      %c0_7 = arith.constant 0 : index
      %c0_8 = arith.constant 0 : index
      %18 = vector.load %arg5[%c0_7, %c0_8] : memref<128x128xbf16, #tpu.memory_space<vmem>>, vector<128x128xbf16>
      %cst_9 = arith.constant dense<0.000000e+00> : vector<128x128xf32>
      %19 = tpu.matmul %17, %18, %cst_9 {dimension_numbers = #tpu.dot_dimension_numbers<[1], [0], [0], [1], [0, 0, 1, 1], [], []>} : vector<128x128xbf16>, vector<128x128xbf16>, vector<128x128xf32> -> vector<128x128xf32>
      %20 = arith.truncf %19 : vector<128x128xf32> to vector<128x128xbf16>
      %21 = arith.index_cast %1 : i32 to index
      %c0_10 = arith.constant 0 : index
      %22 = vector.load %arg8[%21, %c0_10] : memref<128x128xbf16, #tpu.memory_space<vmem>>, vector<128x128xbf16>
      tpu.vector_store %arg8[%21, %c0_10], %20 {strides = array<i32>} : memref<128x128xbf16, #tpu.memory_space<vmem>>, vector<128x128xbf16>,
    } else {
    }
    %c1_i32 = arith.constant 1 : i32
    %5 = arith.cmpi eq, %arg0, %c1_i32 : i32
    %6 = arith.extui %5 : i1 to i32
    %c0_i32_1 = arith.constant 0 : i32
    %7 = arith.cmpi ne, %6, %c0_i32_1 : i32
    scf.if %7 {
      %8 = arith.index_cast %1 : i32 to index
      %c0 = arith.constant 0 : index
      %9 = vector.load %arg2[%8, %c0] : memref<128x128xbf16, #tpu.memory_space<vmem>>, vector<128x128xbf16>
      %c0_2 = arith.constant 0 : index
      %c0_3 = arith.constant 0 : index
      %10 = vector.load %arg8[%c0_2, %c0_3] : memref<128x128xbf16, #tpu.memory_space<vmem>>, vector<128x128xbf16>
      %cst = arith.constant dense<0.000000e+00> : vector<128x128xf32>
      %11 = tpu.matmul %9, %10, %cst {dimension_numbers = #tpu.dot_dimension_numbers<[1], [0], [0], [1], [0, 0, 1, 1], [], []>} : vector<128x128xbf16>, vector<128x128xbf16>, vector<128x128xf32> -> vector<128x128xf32>
      %c0_4 = arith.constant 0 : index
      %c0_5 = arith.constant 0 : index
      %12 = vector.load %arg6[%c0_4, %c0_5] : memref<1x128xf32, #tpu.memory_space<vmem>>, vector<1x128xf32>
      %13 = vector.broadcast %12 : vector<1x128xf32> to vector<128x128xf32>
      %14 = arith.addf %11, %13 : vector<128x128xf32>
      %c0_6 = arith.constant 0 : index
      %c0_7 = arith.constant 0 : index
      %15 = vector.load %arg7[%c0_6, %c0_7] : memref<128x128xf32, #tpu.memory_space<vmem>>, vector<128x128xf32>
      tpu.vector_store %arg7[%c0_6, %c0_7], %14 {strides = array<i32>} : memref<128x128xf32, #tpu.memory_space<vmem>>, vector<128x128xf32>,
    } else {
    }
    return
  }
  func.func @transform_0(%arg0: i32, %arg1: i32) -> (i32, i32) {
    %c0_i32 = arith.constant 0 : i32
    %c0_i32_0 = arith.constant 0 : i32
    %c0_i32_1 = arith.constant 0 : i32
    return %c0_i32, %c0_i32_0 : i32, i32
  }
  func.func @transform_1(%arg0: i32, %arg1: i32) -> (i32, i32) {
    %c0_i32 = arith.constant 0 : i32
    %c0_i32_0 = arith.constant 0 : i32
    %c0_i32_1 = arith.constant 0 : i32
    return %c0_i32, %c0_i32_0 : i32, i32
  }
  func.func @transform_2(%arg0: i32, %arg1: i32) -> (i32, i32) {
    %c0_i32 = arith.constant 0 : i32
    %c0_i32_0 = arith.constant 0 : i32
    %c0_i32_1 = arith.constant 0 : i32
    return %c0_i32, %c0_i32_0 : i32, i32
  }
  func.func @transform_3(%arg0: i32, %arg1: i32) -> (i32, i32) {
    %c0_i32 = arith.constant 0 : i32
    %c0_i32_0 = arith.constant 0 : i32
    %c0_i32_1 = arith.constant 0 : i32
    return %c0_i32, %c0_i32_0 : i32, i32
  }
  func.func @transform_4(%arg0: i32, %arg1: i32) -> (i32, i32) {
    %c0_i32 = arith.constant 0 : i32
    %c0_i32_0 = arith.constant 0 : i32
    %c0_i32_1 = arith.constant 0 : i32
    return %c0_i32, %c0_i32_0 : i32, i32
  }
  func.func @transform_5(%arg0: i32, %arg1: i32) -> (i32, i32) {
    %0 = arith.muli %arg1, %arg0 : i32
    %c0_i32 = arith.constant 0 : i32
    %c0_i32_0 = arith.constant 0 : i32
    return %0, %c0_i32 : i32, i32
  }
}

</mosaic_0001>

<bundles_post_ra>
// kernel: tpu_custom_call.1
= control target key start
LH: loop header
LB: loop body
LE: loop exit
PB: predicated region body
PF: predicated region fallthrough
CT: control target
= control target key end

     0   :  { %10 = vsyncpa [#allocation4], 0  ;;  %s1605_s0 = inlined_call_operand.hbm [shape: bf16[128,128], index: 0, kind: input, shape index: {}]   ;;  %s1606_s1 = inlined_call_operand.hbm [shape: bf16[128,128], index: 1, kind: input, shape index: {}]   ;;  %s1607_s2 = inlined_call_operand.vmem [shape: f32[1,128], index: 2, kind: input, shape index: {}]   ;;  %s1608_s3 = inlined_call_operand.hbm [shape: bf16[128,128], index: 3, kind: input, shape index: {}]   ;;  %s1609_s4 = inlined_call_operand.vmem [shape: f32[1,128], index: 4, kind: input, shape index: {}]   ;;  %s1610_s5 = inlined_call_operand.hbm [shape: f32[128,128], index: 5, kind: output, shape index: {}]  }
   0x1   :  { %11 = vsyncpa [#allocation7], 0 }
   0x2   :  { %12 = vsyncpa [#allocation5], 0 }
   0x3   :  { %14 = vsyncpa [#allocation5 + $0x1], 0  ;;  %s1515_s18 = smov 0   ;;  %s1517_s19 = smov 0  }
   0x4   :  { %s1519_s20 = smov 0  }
   0x5 LB: > { %s947_s21 = sadd.s32 4294967295, %s1475_s20   ;;  %s948_s22 = sadd.s32 4294967294, %s1475_s20   ;;  %s1475_s20 = sphi %s1519_s20, %s20_s20   ;;  %s1471_s19 = sphi %s1517_s19, %s1615_s19   ;;  %s1467_s18 = sphi %s1515_s18, %s1614_s18  }
   0x6   : > { %p949_p0 = scmp.ge.s32.totalorder %s1475_s20, 1  ;;  %p170_p1 = scmp.lt.s32.totalorder %s1475_s20, 3 }
   0x7   : > { %p1536_p2 = scmp.eq.s32.totalorder %s947_s21, 0  ;;  %s195_s27 = sshll.u32 %s1606_s1, 4  ;;  %s196_s27 = int_to_ptr.hbm [resolvable:$true] %s195_s27 }
   0x8   : > { %p1540_p3 = pnand %p949_p0, %p170_p1  ;;  %s1477_s28 = smov [#allocation6]  }
   0x9   : > { %s197_s29 = sshll.u32 %s1477_s28, 4  ;;  %s32_s6 = sadd.s32 1, %s1471_s19  ;;  %s198_s29 = int_to_ptr.vmem [resolvable:$true] %s197_s29 }
   0xa   : > { %p1266_p4 = pneg %p1540_p3  ;;  %s1478_s7 = smov 64  }
   0xb   : > { %s1479_s8 = smov 4   ;;  %p34_p6 = scmp.ge.s32.totalorder %s32_s6, 2 }
   0xc   : > { %p1551_p5 = pnand %p1536_p2, %p1266_p4  ;;  %s181_s11 = sshll.u32 %s1605_s0, 4  ;;  %s182_s11 = int_to_ptr.hbm [resolvable:$true] %s181_s11 }
   0xd   : > { %s1617_s6 = smov (%p34_p6, %s32_s6), 0  ;;  %s1480_s12 = smov [#allocation3]  }
   0xe   : > { %1272 = dma.hbm_to_vmem [thread:$0]  (!%p1551_p5), %s196_s27, 1024, %s198_s29, [#allocation7], %s1478_s7, %s1478_s7, %s1479_s8  }
   0xf   : > { %s183_s13 = sshll.u32 %s1480_s12, 4  ;;  %s212_s16 = sshll.u32 %s1608_s3, 4  ;;  %s184_s13 = int_to_ptr.vmem [resolvable:$true] %s183_s13  ;;  %s213_s16 = int_to_ptr.hbm [resolvable:$true] %s212_s16 }
  0x10   : > { %1269 = dma.hbm_to_vmem [thread:$0]  (!%p1551_p5), %s182_s11, 1024, %s184_s13, [#allocation4], %s1478_s7, %s1478_s7, %s1479_s8  }
  0x11   : > { %s1481_s17 = smov [#allocation8]   ;;  %233 = sbr.rel (%p1540_p3) target bundleno = 605 (0x25d), region = 40 }
  0x12   : > { %s214_s25 = sshll.u32 %s1481_s17, 4  ;;  %s215_s25 = int_to_ptr.vmem [resolvable:$true] %s214_s25 }
  0x13   : > { %1275 = dma.hbm_to_vmem [thread:$0]  (!%p1551_p5), %s213_s16, 1024, %s215_s25, [#allocation7], %s1478_s7, %s1478_s7, %s1479_s8  }
  0x16   : > { %1454 = dma.done.wait (%p1536_p2), [#allocation4], 1024  }
  0x17   : > { %1456 = vsyncadd (%p1536_p2), [#allocation4], 4294966272 }
  0x18   : > { %1458 = dma.done.wait (%p1536_p2), [#allocation7], 2048  }
  0x19   : > { %1460 = vsyncadd (%p1536_p2), [#allocation7], 4294965248  ;;  %p957_p7 = scmp.ne.s32.totalorder %s1467_s18, 0 }
  0x1b   : > { %273 = sbr.rel (%p957_p7) target bundleno = 401 (0x191), region = 56 }
  0x20   : > { %v1138_v0 = vld [vmem:[#allocation6 + $0x38] sm:$0xff]  ;;  %v1137_v1 = vld [vmem:[#allocation6 + $0x30] sm:$0xff]  ;;  %v1136_v2 = vld [vmem:[#allocation6 + $0x28] sm:$0xff] }
  0x21   : > { %410 = vmatpush.bf16.msra.mxu0 %v1138_v0  ;;  %1210 = vmatpush.bf16.msra.mxu2 %v1138_v0  ;;  %v1135_v3 = vld [vmem:[#allocation6 + $0x20] sm:$0xff]  ;;  %v1134_v4 = vld [vmem:[#allocation6 + $0x18] sm:$0xff]  ;;  %v1133_v5 = vld [vmem:[#allocation6 + $0x10] sm:$0xff] }
  0x22   : > { %v1132_v6 = vld [vmem:[#allocation6 + $0x8] sm:$0xff]  ;;  %v1131_v7 = vld [vmem:[#allocation6] sm:$0xff]  ;;  %v1146_v12 = vld [vmem:[#allocation8 + $0x38] sm:$0xff] }
  0x23   : > { %v1123_v8 = vld [vmem:[#allocation3] sm:$0xff]  ;;  %v1124_v10 = vld [vmem:[#allocation3 + $0x8] sm:$0xff]  ;;  %547 = vmatpush.bf16.msra.mxu1 %v1146_v12  ;;  %v1145_v13 = vld [vmem:[#allocation8 + $0x30] sm:$0xff]  ;;  %1218 = vmatpush.bf16.msra.mxu3 %v1146_v12 }
  0x24   : > { %v1127_v9 = vld [vmem:[#allocation3 + $0x20] sm:$0xff]  ;;  %v1128_v11 = vld [vmem:[#allocation3 + $0x28] sm:$0xff]  ;;  %v1125_v16 = vld [vmem:[#allocation3 + $0x10] sm:$0xff] }
  0x25   : > { %411 = vmatpush.bf16.msra.mxu0 %v1137_v1  ;;  %1211 = vmatpush.bf16.msra.mxu2 %v1137_v1  ;;  %v1144_v14 = vld [vmem:[#allocation8 + $0x28] sm:$0xff]  ;;  %v1143_v15 = vld [vmem:[#allocation8 + $0x20] sm:$0xff]  ;;  %v1129_v17 = vld [vmem:[#allocation3 + $0x30] sm:$0xff] }
  0x26   : > { %v1126_v18 = vld [vmem:[#allocation3 + $0x18] sm:$0xff]  ;;  %v1141_v21 = vld [vmem:[#allocation8 + $0x10] sm:$0xff]  ;;  %v1140_v22 = vld [vmem:[#allocation8 + $0x8] sm:$0xff] }
  0x27   : > { %548 = vmatpush.bf16.msra.mxu1 %v1145_v13  ;;  %1219 = vmatpush.bf16.msra.mxu3 %v1145_v13  ;;  %v1130_v19 = vld [vmem:[#allocation3 + $0x38] sm:$0xff]  ;;  %v1139_v23 = vld [vmem:[#allocation8] sm:$0xff] }
  0x28   : > { %v1142_v20 = vld [vmem:[#allocation8 + $0x18] sm:$0xff]  ;;  %v1321_v25 = vld [vmem:[%s1607_s2] ss:$0 sm:$0xff] }
  0x29   : > { %412 = vmatpush.bf16.msra.mxu0 %v1136_v2  ;;  %1212 = vmatpush.bf16.msra.mxu2 %v1136_v2 }
  0x2b   : > { %549 = vmatpush.bf16.msra.mxu1 %v1144_v14  ;;  %1220 = vmatpush.bf16.msra.mxu3 %v1144_v14 }
  0x2d   : > { %413 = vmatpush.bf16.msra.mxu0 %v1135_v3  ;;  %1213 = vmatpush.bf16.msra.mxu2 %v1135_v3 }
  0x2f   : > { %550 = vmatpush.bf16.msra.mxu1 %v1143_v15  ;;  %1221 = vmatpush.bf16.msra.mxu3 %v1143_v15 }
  0x31   : > { %414 = vmatpush.bf16.msra.mxu0 %v1134_v4  ;;  %1214 = vmatpush.bf16.msra.mxu2 %v1134_v4 }
  0x33   : > { %551 = vmatpush.bf16.msra.mxu1 %v1142_v20  ;;  %1222 = vmatpush.bf16.msra.mxu3 %v1142_v20 }
  0x35   : > { %415 = vmatpush.bf16.msra.mxu0 %v1133_v5  ;;  %1215 = vmatpush.bf16.msra.mxu2 %v1133_v5 }
  0x37   : > { %552 = vmatpush.bf16.msra.mxu1 %v1141_v21  ;;  %1223 = vmatpush.bf16.msra.mxu3 %v1141_v21 }
  0x39   : > { %416 = vmatpush.bf16.msra.mxu0 %v1132_v6  ;;  %1216 = vmatpush.bf16.msra.mxu2 %v1132_v6 }
  0x3b   : > { %553 = vmatpush.bf16.msra.mxu1 %v1140_v22  ;;  %1224 = vmatpush.bf16.msra.mxu3 %v1140_v22 }
  0x3d   : > { %417 = vmatpush.bf16.msra.mxu0 %v1131_v7  ;;  %1217 = vmatpush.bf16.msra.mxu2 %v1131_v7 }
  0x3f   : > { %554 = vmatpush.bf16.msra.mxu1 %v1139_v23  ;;  %1225 = vmatpush.bf16.msra.mxu3 %v1139_v23 }
  0x40   : > { %418 = vmatmul.bf16.vlgmr.msra.gmra.mxu0 %v1123_v8  ;;  %438 = vmatmul.bf16.vlgmr.msra.gmra.mxu2 %v1127_v9 }
  0x50   : > { %423 = vmatmul.bf16.gmra.mxu0 %v1124_v10  ;;  %443 = vmatmul.bf16.gmra.mxu2 %v1128_v11 }
  0x60   : > { %428 = vmatmul.bf16.gmra.mxu0 %v1125_v16  ;;  %448 = vmatmul.bf16.gmra.mxu2 %v1129_v17 }
  0x70   : > { %433 = vmatmul.bf16.gmra.mxu0 %v1126_v18  ;;  %453 = vmatmul.bf16.gmra.mxu2 %v1130_v19 }
  0xbd   : > { %v419_v24 = vpop.f32.mrf.mxu0 }
  0xbe   : > { %v420_v26 = vadd.f32 %v1321_v25, %v419_v24 }
  0xc0   : > { %v459_v29 = vmax.f32 %v420_v26, 0.0 }
  0xc3   : > { %v439_v27 = vpop.f32.mrf.mxu2 }
  0xc4   : > { %v440_v32 = vadd.f32 %v1321_v25, %v439_v27 }
  0xc5   : > { %v421_v28 = vpop.f32.mrf.mxu0 }
  0xc6   : > { %v422_v30 = vadd.f32 %v1321_v25, %v421_v28  ;;  %v467_v37 = vmax.f32 %v440_v32, 0.0 }
  0xc8   : > { %v460_v31 = vmax.f32 %v422_v30, 0.0 }
  0xca   : > { %v475_v33 = vpack.c.bf16 %v460_v31, %v459_v29 }
  0xcb   : > { %v441_v34 = vpop.f32.mrf.mxu2 }
  0xcc   : > { %v442_v35 = vadd.f32 %v1321_v25, %v441_v34  ;;  %555 = vmatmul.bf16.vlgmr.msra.gmra.mxu1 %v475_v33 }
  0xcd   : > { %v424_v36 = vpop.f32.mrf.mxu0 }
  0xce   : > { %v468_v38 = vmax.f32 %v442_v35, 0.0  ;;  %v425_v40 = vadd.f32 %v1321_v25, %v424_v36 }
  0xd0   : > { %v479_v39 = vpack.c.bf16 %v468_v38, %v467_v37  ;;  %v461_v43 = vmax.f32 %v425_v40, 0.0 }
  0xd2   : > { %575 = vmatmul.bf16.vlgmr.msra.gmra.mxu3 %v479_v39 }
  0xd3   : > { %v444_v41 = vpop.f32.mrf.mxu2 }
  0xd4   : > { %v445_v46 = vadd.f32 %v1321_v25, %v444_v41 }
  0xd5   : > { %v426_v42 = vpop.f32.mrf.mxu0 }
  0xd6   : > { %v427_v44 = vadd.f32 %v1321_v25, %v426_v42  ;;  %v469_v51 = vmax.f32 %v445_v46, 0.0 }
  0xd8   : > { %v462_v45 = vmax.f32 %v427_v44, 0.0 }
  0xda   : > { %v476_v47 = vpack.c.bf16 %v462_v45, %v461_v43 }
  0xdb   : > { %v446_v48 = vpop.f32.mrf.mxu2 }
  0xdc   : > { %v447_v49 = vadd.f32 %v1321_v25, %v446_v48  ;;  %560 = vmatmul.bf16.gmra.mxu1 %v476_v47 }
  0xdd   : > { %v429_v50 = vpop.f32.mrf.mxu0 }
  0xde   : > { %v470_v52 = vmax.f32 %v447_v49, 0.0  ;;  %v430_v54 = vadd.f32 %v1321_v25, %v429_v50 }
  0xe0   : > { %v480_v53 = vpack.c.bf16 %v470_v52, %v469_v51  ;;  %v463_v57 = vmax.f32 %v430_v54, 0.0 }
  0xe2   : > { %580 = vmatmul.bf16.gmra.mxu3 %v480_v53 }
  0xe3   : > { %v449_v55 = vpop.f32.mrf.mxu2 }
  0xe4   : > { %v450_v60 = vadd.f32 %v1321_v25, %v449_v55 }
  0xe5   : > { %v431_v56 = vpop.f32.mrf.mxu0 }
  0xe6   : > { %v432_v58 = vadd.f32 %v1321_v25, %v431_v56  ;;  %v471_v1 = vmax.f32 %v450_v60, 0.0 }
  0xe8   : > { %v464_v59 = vmax.f32 %v432_v58, 0.0 }
  0xea   : > { %v477_v61 = vpack.c.bf16 %v464_v59, %v463_v57 }
  0xeb   : > { %v451_v62 = vpop.f32.mrf.mxu2 }
  0xec   : > { %v452_v63 = vadd.f32 %v1321_v25, %v451_v62  ;;  %565 = vmatmul.bf16.gmra.mxu1 %v477_v61 }
  0xed   : > { %v434_v0 = vpop.f32.mrf.mxu0 }
  0xee   : > { %v472_v2 = vmax.f32 %v452_v63, 0.0  ;;  %v435_v4 = vadd.f32 %v1321_v25, %v434_v0 }
  0xf0   : > { %v481_v3 = vpack.c.bf16 %v472_v2, %v471_v1  ;;  %v465_v7 = vmax.f32 %v435_v4, 0.0 }
  0xf2   : > { %585 = vmatmul.bf16.gmra.mxu3 %v481_v3 }
  0xf3   : > { %v454_v5 = vpop.f32.mrf.mxu2 }
  0xf4   : > { %v455_v10 = vadd.f32 %v1321_v25, %v454_v5 }
  0xf5   : > { %v436_v6 = vpop.f32.mrf.mxu0 }
  0xf6   : > { %v437_v8 = vadd.f32 %v1321_v25, %v436_v6  ;;  %v473_v14 = vmax.f32 %v455_v10, 0.0 }
  0xf8   : > { %v466_v9 = vmax.f32 %v437_v8, 0.0 }
  0xfa   : > { %v478_v11 = vpack.c.bf16 %v466_v9, %v465_v7 }
  0xfb   : > { %v456_v12 = vpop.f32.mrf.mxu2 }
  0xfc   : > { %v457_v13 = vadd.f32 %v1321_v25, %v456_v12  ;;  %570 = vmatmul.bf16.gmra.mxu1 %v478_v11 }
  0xfe   : > { %v474_v15 = vmax.f32 %v457_v13, 0.0 }
 0x100   : > { %v482_v16 = vpack.c.bf16 %v474_v15, %v473_v14 }
 0x102   : > { %590 = vmatmul.bf16.gmra.mxu3 %v482_v16 }
 0x149   : > { %v556_v17 = vpop.f32.mrf.mxu1 }
 0x151   : > { %v558_v18 = vpop.f32.mrf.mxu1 }
 0x152   : > { %v1166_v19 = vpack.c.bf16 %v558_v18, %v556_v17 }
 0x154   : > { %1167 = vst [vmem:[#allocation2 + $0x30] sm:$0xff] %v1166_v19  }
 0x155   : > { %v576_v20 = vpop.f32.mrf.mxu3 }
 0x159   : > { %v561_v21 = vpop.f32.mrf.mxu1 }
 0x15d   : > { %v578_v22 = vpop.f32.mrf.mxu3 }
 0x15e   : > { %v1186_v23 = vpack.c.bf16 %v578_v22, %v576_v20 }
 0x160   : > { %1206 = vst [vmem:[#allocation2 + $0x8] sm:$0xff] %v1186_v23  }
 0x161   : > { %v563_v24 = vpop.f32.mrf.mxu1 }
 0x162   : > { %v1171_v26 = vpack.c.bf16 %v563_v24, %v561_v21 }
 0x164   : > { %1203 = vst [vmem:[#allocation2] sm:$0xff] %v1171_v26  }
 0x165   : > { %v581_v27 = vpop.f32.mrf.mxu3 }
 0x169   : > { %v566_v28 = vpop.f32.mrf.mxu1 }
 0x16d   : > { %v583_v25 = vpop.f32.mrf.mxu3 }
 0x16e   : > { %v1191_v29 = vpack.c.bf16 %v583_v25, %v581_v27 }
 0x170   : > { %1207 = vst [vmem:[#allocation2 + $0x20] sm:$0xff] %v1191_v29  }
 0x171   : > { %v568_v30 = vpop.f32.mrf.mxu1 }
 0x172   : > { %v1176_v31 = vpack.c.bf16 %v568_v30, %v566_v28 }
 0x174   : > { %1204 = vst [vmem:[#allocation2 + $0x18] sm:$0xff] %v1176_v31  }
 0x175   : > { %v586_v32 = vpop.f32.mrf.mxu3 }
 0x179   : > { %v571_v33 = vpop.f32.mrf.mxu1 }
 0x17d   : > { %v588_v34 = vpop.f32.mrf.mxu3 }
 0x17e   : > { %v1196_v35 = vpack.c.bf16 %v588_v34, %v586_v32 }
 0x180   : > { %1208 = vst [vmem:[#allocation2 + $0x28] sm:$0xff] %v1196_v35  }
 0x181   : > { %v573_v36 = vpop.f32.mrf.mxu1 }
 0x182   : > { %v1181_v37 = vpack.c.bf16 %v573_v36, %v571_v33 }
 0x184   : > { %1205 = vst [vmem:[#allocation2 + $0x10] sm:$0xff] %v1181_v37  }
 0x185   : > { %v591_v38 = vpop.f32.mrf.mxu3 }
 0x18d   : > { %v593_v39 = vpop.f32.mrf.mxu3 }
 0x18e   : > { %v1201_v40 = vpack.c.bf16 %v593_v39, %v591_v38 }
 0x190   : > { %1209 = vst [vmem:[#allocation2 + $0x38] sm:$0xff] %v1201_v40  }
 0x191 PF: > { %p1054_p8 = scmp.ne.s32.totalorder %s1467_s18, 1 }
 0x193   : > { %633 = sbr.rel (%p1054_p8) target bundleno = 601 (0x259), region = 60 }
 0x198   : > { %v1162_v41 = vld [vmem:[#allocation2 + $0x38] sm:$0xff]  ;;  %v1161_v42 = vld [vmem:[#allocation2 + $0x28] sm:$0xff]  ;;  %v1160_v43 = vld [vmem:[#allocation2 + $0x20] sm:$0xff] }
 0x199   : > { %770 = vmatpush.bf16.msra.mxu0 %v1162_v41  ;;  %1226 = vmatpush.bf16.msra.mxu1 %v1162_v41  ;;  %v1159_v44 = vld [vmem:[#allocation2 + $0x8] sm:$0xff]  ;;  %v1158_v45 = vld [vmem:[#allocation2 + $0x10] sm:$0xff]  ;;  %v1157_v46 = vld [vmem:[#allocation2 + $0x18] sm:$0xff] }
 0x19a   : > { %1227 = vmatpush.bf16.msra.mxu2 %v1162_v41  ;;  %1228 = vmatpush.bf16.msra.mxu3 %v1162_v41  ;;  %v1156_v47 = vld [vmem:[#allocation2] sm:$0xff]  ;;  %v1155_v48 = vld [vmem:[#allocation2 + $0x30] sm:$0xff]  ;;  %v1148_v53 = vld [vmem:[#allocation3 + $0x8] sm:$0xff] }
 0x19b   : > { %v1147_v49 = vld [vmem:[#allocation3] sm:$0xff]  ;;  %v1149_v50 = vld [vmem:[#allocation3 + $0x10] sm:$0xff]  ;;  %v1150_v54 = vld [vmem:[#allocation3 + $0x18] sm:$0xff] }
 0x19c   : > { %v1151_v51 = vld [vmem:[#allocation3 + $0x20] sm:$0xff]  ;;  %v1153_v52 = vld [vmem:[#allocation3 + $0x30] sm:$0xff]  ;;  %v1152_v55 = vld [vmem:[#allocation3 + $0x28] sm:$0xff] }
 0x19d   : > { %771 = vmatpush.bf16.msra.mxu0 %v1161_v42  ;;  %1229 = vmatpush.bf16.msra.mxu1 %v1161_v42  ;;  %v1154_v56 = vld [vmem:[#allocation3 + $0x38] sm:$0xff]  ;;  %v1322_v57 = vld [vmem:[%s1609_s4] ss:$0 sm:$0xff] }
 0x19e   : > { %1230 = vmatpush.bf16.msra.mxu2 %v1161_v42  ;;  %1231 = vmatpush.bf16.msra.mxu3 %v1161_v42 }
 0x1a1   : > { %772 = vmatpush.bf16.msra.mxu0 %v1160_v43  ;;  %1232 = vmatpush.bf16.msra.mxu1 %v1160_v43 }
 0x1a2   : > { %1233 = vmatpush.bf16.msra.mxu2 %v1160_v43  ;;  %1234 = vmatpush.bf16.msra.mxu3 %v1160_v43 }
 0x1a5   : > { %773 = vmatpush.bf16.msra.mxu0 %v1159_v44  ;;  %1235 = vmatpush.bf16.msra.mxu1 %v1159_v44 }
 0x1a6   : > { %1236 = vmatpush.bf16.msra.mxu2 %v1159_v44  ;;  %1237 = vmatpush.bf16.msra.mxu3 %v1159_v44 }
 0x1a9   : > { %774 = vmatpush.bf16.msra.mxu0 %v1158_v45  ;;  %1238 = vmatpush.bf16.msra.mxu1 %v1158_v45 }
 0x1aa   : > { %1239 = vmatpush.bf16.msra.mxu2 %v1158_v45  ;;  %1240 = vmatpush.bf16.msra.mxu3 %v1158_v45 }
 0x1ad   : > { %775 = vmatpush.bf16.msra.mxu0 %v1157_v46  ;;  %1241 = vmatpush.bf16.msra.mxu1 %v1157_v46 }
 0x1ae   : > { %1242 = vmatpush.bf16.msra.mxu2 %v1157_v46  ;;  %1243 = vmatpush.bf16.msra.mxu3 %v1157_v46 }
 0x1b1   : > { %776 = vmatpush.bf16.msra.mxu0 %v1156_v47  ;;  %1244 = vmatpush.bf16.msra.mxu1 %v1156_v47 }
 0x1b2   : > { %1245 = vmatpush.bf16.msra.mxu2 %v1156_v47  ;;  %1246 = vmatpush.bf16.msra.mxu3 %v1156_v47 }
 0x1b5   : > { %777 = vmatpush.bf16.msra.mxu0 %v1155_v48  ;;  %1247 = vmatpush.bf16.msra.mxu1 %v1155_v48 }
 0x1b6   : > { %1248 = vmatpush.bf16.msra.mxu2 %v1155_v48  ;;  %1249 = vmatpush.bf16.msra.mxu3 %v1155_v48 }
 0x1b8   : > { %778 = vmatmul.bf16.vlgmr.msra.gmra.mxu0 %v1147_v49  ;;  %788 = vmatmul.bf16.vlgmr.msra.gmra.mxu1 %v1149_v50 }
 0x1b9   : > { %798 = vmatmul.bf16.vlgmr.msra.gmra.mxu2 %v1151_v51  ;;  %808 = vmatmul.bf16.vlgmr.msra.gmra.mxu3 %v1153_v52 }
 0x1c8   : > { %783 = vmatmul.bf16.gmra.mxu0 %v1148_v53  ;;  %793 = vmatmul.bf16.gmra.mxu1 %v1150_v54 }
 0x1c9   : > { %803 = vmatmul.bf16.gmra.mxu2 %v1152_v55  ;;  %813 = vmatmul.bf16.gmra.mxu3 %v1154_v56 }
 0x235   : > { %v779_v58 = vpop.f32.mrf.mxu0  ;;  %v789_v59 = vpop.f32.mrf.mxu1 }
 0x236   : > { %v780_v60 = vadd.f32 %v1322_v57, %v779_v58  ;;  %v790_v61 = vadd.f32 %v1322_v57, %v789_v59 }
 0x238   : > { %819 = vst [vmem:[#allocation9] sm:$0xff] %v780_v60 }
 0x239   : > { %823 = vst [vmem:[#allocation9 + $0x20] sm:$0xff] %v790_v61 }
 0x23c   : > { %v799_v62 = vpop.f32.mrf.mxu2  ;;  %v809_v63 = vpop.f32.mrf.mxu3 }
 0x23d   : > { %v800_v0 = vadd.f32 %v1322_v57, %v799_v62  ;;  %v810_v1 = vadd.f32 %v1322_v57, %v809_v63  ;;  %v781_v2 = vpop.f32.mrf.mxu0  ;;  %v791_v3 = vpop.f32.mrf.mxu1 }
 0x23e   : > { %v782_v4 = vadd.f32 %v1322_v57, %v781_v2  ;;  %v792_v5 = vadd.f32 %v1322_v57, %v791_v3 }
 0x23f   : > { %827 = vst [vmem:[#allocation9 + $0x40] sm:$0xff] %v800_v0 }
 0x240   : > { %831 = vst [vmem:[#allocation9 + $0x60] sm:$0xff] %v810_v1 }
 0x241   : > { %820 = vst [vmem:[#allocation9 + $0x8] sm:$0xff] %v782_v4 }
 0x242   : > { %824 = vst [vmem:[#allocation9 + $0x28] sm:$0xff] %v792_v5 }
 0x244   : > { %v801_v6 = vpop.f32.mrf.mxu2  ;;  %v811_v7 = vpop.f32.mrf.mxu3 }
 0x245   : > { %v802_v8 = vadd.f32 %v1322_v57, %v801_v6  ;;  %v812_v9 = vadd.f32 %v1322_v57, %v811_v7  ;;  %v784_v10 = vpop.f32.mrf.mxu0  ;;  %v794_v11 = vpop.f32.mrf.mxu1 }
 0x246   : > { %v785_v12 = vadd.f32 %v1322_v57, %v784_v10  ;;  %v795_v13 = vadd.f32 %v1322_v57, %v794_v11 }
 0x247   : > { %828 = vst [vmem:[#allocation9 + $0x48] sm:$0xff] %v802_v8 }
 0x248   : > { %832 = vst [vmem:[#allocation9 + $0x68] sm:$0xff] %v812_v9 }
 0x249   : > { %821 = vst [vmem:[#allocation9 + $0x10] sm:$0xff] %v785_v12 }
 0x24a   : > { %825 = vst [vmem:[#allocation9 + $0x30] sm:$0xff] %v795_v13 }
 0x24c   : > { %v804_v14 = vpop.f32.mrf.mxu2  ;;  %v814_v15 = vpop.f32.mrf.mxu3 }
 0x24d   : > { %v805_v16 = vadd.f32 %v1322_v57, %v804_v14  ;;  %v815_v17 = vadd.f32 %v1322_v57, %v814_v15  ;;  %v786_v18 = vpop.f32.mrf.mxu0  ;;  %v796_v19 = vpop.f32.mrf.mxu1 }
 0x24e   : > { %v787_v20 = vadd.f32 %v1322_v57, %v786_v18  ;;  %v797_v21 = vadd.f32 %v1322_v57, %v796_v19 }
 0x24f   : > { %829 = vst [vmem:[#allocation9 + $0x50] sm:$0xff] %v805_v16 }
 0x250   : > { %833 = vst [vmem:[#allocation9 + $0x70] sm:$0xff] %v815_v17 }
 0x251   : > { %822 = vst [vmem:[#allocation9 + $0x18] sm:$0xff] %v787_v20 }
 0x252   : > { %826 = vst [vmem:[#allocation9 + $0x38] sm:$0xff] %v797_v21 }
 0x254   : > { %v806_v22 = vpop.f32.mrf.mxu2  ;;  %v816_v23 = vpop.f32.mrf.mxu3 }
 0x255   : > { %v807_v24 = vadd.f32 %v1322_v57, %v806_v22  ;;  %v817_v26 = vadd.f32 %v1322_v57, %v816_v23 }
 0x257   : > { %830 = vst [vmem:[#allocation9 + $0x58] sm:$0xff] %v807_v24 }
 0x258   : > { %834 = vst [vmem:[#allocation9 + $0x78] sm:$0xff] %v817_v26 }
 0x259 PF: > { %p1286_p9 = scmp.eq.s32.totalorder %s947_s21, 1  ;;  %s851_s29 = sshll.u32 %s1610_s5, 4  ;;  %s852_s29 = int_to_ptr.hbm [resolvable:$true] %s851_s29 }
 0x25a   : > { %s1482_s30 = smov [#allocation9]   ;;  %s1483_s8 = smov 128  }
 0x25b   : > { %s849_s7 = sshll.u32 %s1482_s30, 4  ;;  %s1484_s9 = smov 8   ;;  %s850_s7 = int_to_ptr.vmem [resolvable:$true] %s849_s7 }
 0x25c   : > { %1263 = dma.vmem_to_hbm [thread:$0]  (%p1286_p9), %s850_s7, 2048, %s852_s29, [#allocation5], %s1483_s8, %s1483_s8, %s1484_s9  }
 0x25d PF: > { %p1287_p10 = scmp.ge.s32.totalorder %s1475_s20, 2  ;;  %p1288_p11 = scmp.eq.s32.totalorder %s948_s22, 1 }
 0x25f   : > { %p1277_p12 = pnand %p1288_p11, %p1287_p10 }
 0x261   : > { %p1278_p13 = pneg %p1277_p12 }
 0x263   : > { %1462 = dma.done.wait (%p1278_p13), [#allocation5], 2048  }
 0x264   : > { %1464 = vsyncadd (%p1278_p13), [#allocation5], 4294965248  ;;  %s20_s20 = sadd.s32 1, %s1475_s20   ;;  %s1614_s18 = smov %s1471_s19 }
 0x265   : > { %p17_p0 = scmp.ge.s32.totalorder %s20_s20, 4   ;;  %s1615_s19 = smov %s1617_s6 }
 0x267   :  { %19 = sbr.rel (!%p17_p0) target bundleno = 5 (0x5), region = 96 }
 0x26c   :  { %873 = vsyncpa [#allocation4], 1 }
 0x26d   :  { %875 = vsyncpa [#allocation4 + $0x1], 1 }
 0x26e   :  { %876 = vsyncpa [#allocation7], 1 }
 0x26f   :  { %877 = vsyncpa [#allocation5], 1 }
 0x270   :  { %879 = vsyncpa [#allocation5 + $0x1], 1 }

// kernel: tpu_custom_call.1
= control target key start
LH: loop header
LB: loop body
LE: loop exit
PB: predicated region body
PF: predicated region fallthrough
CT: control target
= control target key end

     0   :  { %10 = vsyncpa [#allocation4], 0  ;;  %s1605_s0 = inlined_call_operand.hbm [shape: bf16[128,128], index: 0, kind: input, shape index: {}]   ;;  %s1606_s1 = inlined_call_operand.hbm [shape: bf16[128,128], index: 1, kind: input, shape index: {}]   ;;  %s1607_s2 = inlined_call_operand.vmem [shape: f32[1,128], index: 2, kind: input, shape index: {}]   ;;  %s1608_s3 = inlined_call_operand.hbm [shape: bf16[128,128], index: 3, kind: input, shape index: {}]   ;;  %s1609_s4 = inlined_call_operand.vmem [shape: f32[1,128], index: 4, kind: input, shape index: {}]   ;;  %s1610_s5 = inlined_call_operand.hbm [shape: f32[128,128], index: 5, kind: output, shape index: {}]  }
   0x1   :  { %11 = vsyncpa [#allocation7], 0 }
   0x2   :  { %12 = vsyncpa [#allocation5], 0 }
   0x3   :  { %14 = vsyncpa [#allocation5 + $0x1], 0  ;;  %s1515_s18 = smov 0   ;;  %s1517_s19 = smov 0  }
   0x4   :  { %s1519_s20 = smov 0  }
   0x5 LB: > { %s947_s21 = sadd.s32 4294967295, %s1475_s20   ;;  %s948_s22 = sadd.s32 4294967294, %s1475_s20   ;;  %s1475_s20 = sphi %s1519_s20, %s20_s20   ;;  %s1471_s19 = sphi %s1517_s19, %s1615_s19   ;;  %s1467_s18 = sphi %s1515_s18, %s1614_s18  }
   0x6   : > { %p949_p0 = scmp.ge.s32.totalorder %s1475_s20, 1  ;;  %p170_p1 = scmp.lt.s32.totalorder %s1475_s20, 3 }
   0x7   : > { %p1536_p2 = scmp.eq.s32.totalorder %s947_s21, 0  ;;  %s195_s27 = sshll.u32 %s1606_s1, 4  ;;  %s196_s27 = int_to_ptr.hbm [resolvable:$true] %s195_s27 }
   0x8   : > { %p1540_p3 = pnand %p949_p0, %p170_p1  ;;  %s1477_s28 = smov [#allocation6]  }
   0x9   : > { %s197_s29 = sshll.u32 %s1477_s28, 4  ;;  %s32_s6 = sadd.s32 1, %s1471_s19  ;;  %s198_s29 = int_to_ptr.vmem [resolvable:$true] %s197_s29 }
   0xa   : > { %p1266_p4 = pneg %p1540_p3  ;;  %s1478_s7 = smov 64  }
   0xb   : > { %s1479_s8 = smov 4   ;;  %p34_p6 = scmp.ge.s32.totalorder %s32_s6, 2 }
   0xc   : > { %p1551_p5 = pnand %p1536_p2, %p1266_p4  ;;  %s181_s11 = sshll.u32 %s1605_s0, 4  ;;  %s182_s11 = int_to_ptr.hbm [resolvable:$true] %s181_s11 }
   0xd   : > { %s1617_s6 = smov (%p34_p6, %s32_s6), 0  ;;  %s1480_s12 = smov [#allocation3]  }
   0xe   : > { %1272 = dma.hbm_to_vmem [thread:$0]  (!%p1551_p5), %s196_s27, 1024, %s198_s29, [#allocation7], %s1478_s7, %s1478_s7, %s1479_s8  }
   0xf   : > { %s183_s13 = sshll.u32 %s1480_s12, 4  ;;  %s212_s16 = sshll.u32 %s1608_s3, 4  ;;  %s184_s13 = int_to_ptr.vmem [resolvable:$true] %s183_s13  ;;  %s213_s16 = int_to_ptr.hbm [resolvable:$true] %s212_s16 }
  0x10   : > { %1269 = dma.hbm_to_vmem [thread:$0]  (!%p1551_p5), %s182_s11, 1024, %s184_s13, [#allocation4], %s1478_s7, %s1478_s7, %s1479_s8  }
  0x11   : > { %s1481_s17 = smov [#allocation8]   ;;  %233 = sbr.rel (%p1540_p3) target bundleno = 605 (0x25d), region = 40 }
  0x12   : > { %s214_s25 = sshll.u32 %s1481_s17, 4  ;;  %s215_s25 = int_to_ptr.vmem [resolvable:$true] %s214_s25 }
  0x13   : > { %1275 = dma.hbm_to_vmem [thread:$0]  (!%p1551_p5), %s213_s16, 1024, %s215_s25, [#allocation7], %s1478_s7, %s1478_s7, %s1479_s8  }
  0x16   : > { %1454 = dma.done.wait (%p1536_p2), [#allocation4], 1024  }
  0x17   : > { %1456 = vsyncadd (%p1536_p2), [#allocation4], 4294966272 }
  0x18   : > { %1458 = dma.done.wait (%p1536_p2), [#allocation7], 2048  }
  0x19   : > { %1460 = vsyncadd (%p1536_p2), [#allocation7], 4294965248  ;;  %p957_p7 = scmp.ne.s32.totalorder %s1467_s18, 0 }
  0x1b   : > { %273 = sbr.rel (%p957_p7) target bundleno = 401 (0x191), region = 56 }
  0x20   : > { %v1138_v0 = vld [vmem:[#allocation6 + $0x38] sm:$0xff]  ;;  %v1137_v1 = vld [vmem:[#allocation6 + $0x30] sm:$0xff]  ;;  %v1136_v2 = vld [vmem:[#allocation6 + $0x28] sm:$0xff] }
  0x21   : > { %410 = vmatpush.bf16.msra.mxu0 %v1138_v0  ;;  %1210 = vmatpush.bf16.msra.mxu2 %v1138_v0  ;;  %v1135_v3 = vld [vmem:[#allocation6 + $0x20] sm:$0xff]  ;;  %v1134_v4 = vld [vmem:[#allocation6 + $0x18] sm:$0xff]  ;;  %v1133_v5 = vld [vmem:[#allocation6 + $0x10] sm:$0xff] }
  0x22   : > { %v1132_v6 = vld [vmem:[#allocation6 + $0x8] sm:$0xff]  ;;  %v1131_v7 = vld [vmem:[#allocation6] sm:$0xff]  ;;  %v1146_v12 = vld [vmem:[#allocation8 + $0x38] sm:$0xff] }
  0x23   : > { %v1123_v8 = vld [vmem:[#allocation3] sm:$0xff]  ;;  %v1124_v10 = vld [vmem:[#allocation3 + $0x8] sm:$0xff]  ;;  %547 = vmatpush.bf16.msra.mxu1 %v1146_v12  ;;  %v1145_v13 = vld [vmem:[#allocation8 + $0x30] sm:$0xff]  ;;  %1218 = vmatpush.bf16.msra.mxu3 %v1146_v12 }
  0x24   : > { %v1127_v9 = vld [vmem:[#allocation3 + $0x20] sm:$0xff]  ;;  %v1128_v11 = vld [vmem:[#allocation3 + $0x28] sm:$0xff]  ;;  %v1125_v16 = vld [vmem:[#allocation3 + $0x10] sm:$0xff] }
  0x25   : > { %411 = vmatpush.bf16.msra.mxu0 %v1137_v1  ;;  %1211 = vmatpush.bf16.msra.mxu2 %v1137_v1  ;;  %v1144_v14 = vld [vmem:[#allocation8 + $0x28] sm:$0xff]  ;;  %v1143_v15 = vld [vmem:[#allocation8 + $0x20] sm:$0xff]  ;;  %v1129_v17 = vld [vmem:[#allocation3 + $0x30] sm:$0xff] }
  0x26   : > { %v1126_v18 = vld [vmem:[#allocation3 + $0x18] sm:$0xff]  ;;  %v1141_v21 = vld [vmem:[#allocation8 + $0x10] sm:$0xff]  ;;  %v1140_v22 = vld [vmem:[#allocation8 + $0x8] sm:$0xff] }
  0x27   : > { %548 = vmatpush.bf16.msra.mxu1 %v1145_v13  ;;  %1219 = vmatpush.bf16.msra.mxu3 %v1145_v13  ;;  %v1130_v19 = vld [vmem:[#allocation3 + $0x38] sm:$0xff]  ;;  %v1139_v23 = vld [vmem:[#allocation8] sm:$0xff] }
  0x28   : > { %v1142_v20 = vld [vmem:[#allocation8 + $0x18] sm:$0xff]  ;;  %v1321_v25 = vld [vmem:[%s1607_s2] ss:$0 sm:$0xff] }
  0x29   : > { %412 = vmatpush.bf16.msra.mxu0 %v1136_v2  ;;  %1212 = vmatpush.bf16.msra.mxu2 %v1136_v2 }
  0x2b   : > { %549 = vmatpush.bf16.msra.mxu1 %v1144_v14  ;;  %1220 = vmatpush.bf16.msra.mxu3 %v1144_v14 }
  0x2d   : > { %413 = vmatpush.bf16.msra.mxu0 %v1135_v3  ;;  %1213 = vmatpush.bf16.msra.mxu2 %v1135_v3 }
  0x2f   : > { %550 = vmatpush.bf16.msra.mxu1 %v1143_v15  ;;  %1221 = vmatpush.bf16.msra.mxu3 %v1143_v15 }
  0x31   : > { %414 = vmatpush.bf16.msra.mxu0 %v1134_v4  ;;  %1214 = vmatpush.bf16.msra.mxu2 %v1134_v4 }
  0x33   : > { %551 = vmatpush.bf16.msra.mxu1 %v1142_v20  ;;  %1222 = vmatpush.bf16.msra.mxu3 %v1142_v20 }
  0x35   : > { %415 = vmatpush.bf16.msra.mxu0 %v1133_v5  ;;  %1215 = vmatpush.bf16.msra.mxu2 %v1133_v5 }
  0x37   : > { %552 = vmatpush.bf16.msra.mxu1 %v1141_v21  ;;  %1223 = vmatpush.bf16.msra.mxu3 %v1141_v21 }
  0x39   : > { %416 = vmatpush.bf16.msra.mxu0 %v1132_v6  ;;  %1216 = vmatpush.bf16.msra.mxu2 %v1132_v6 }
  0x3b   : > { %553 = vmatpush.bf16.msra.mxu1 %v1140_v22  ;;  %1224 = vmatpush.bf16.msra.mxu3 %v1140_v22 }
  0x3d   : > { %417 = vmatpush.bf16.msra.mxu0 %v1131_v7  ;;  %1217 = vmatpush.bf16.msra.mxu2 %v1131_v7 }
  0x3f   : > { %554 = vmatpush.bf16.msra.mxu1 %v1139_v23  ;;  %1225 = vmatpush.bf16.msra.mxu3 %v1139_v23 }
  0x40   : > { %418 = vmatmul.bf16.vlgmr.msra.gmra.mxu0 %v1123_v8  ;;  %438 = vmatmul.bf16.vlgmr.msra.gmra.mxu2 %v1127_v9 }
  0x50   : > { %423 = vmatmul.bf16.gmra.mxu0 %v1124_v10  ;;  %443 = vmatmul.bf16.gmra.mxu2 %v1128_v11 }
  0x60   : > { %428 = vmatmul.bf16.gmra.mxu0 %v1125_v16  ;;  %448 = vmatmul.bf16.gmra.mxu2 %v1129_v17 }
  0x70   : > { %433 = vmatmul.bf16.gmra.mxu0 %v1126_v18  ;;  %453 = vmatmul.bf16.gmra.mxu2 %v1130_v19 }
  0xbd   : > { %v419_v24 = vpop.f32.mrf.mxu0 }
  0xbe   : > { %v420_v26 = vadd.f32 %v1321_v25, %v419_v24 }
  0xc0   : > { %v459_v29 = vmax.f32 %v420_v26, 0.0 }
  0xc3   : > { %v439_v27 = vpop.f32.mrf.mxu2 }
  0xc4   : > { %v440_v32 = vadd.f32 %v1321_v25, %v439_v27 }
  0xc5   : > { %v421_v28 = vpop.f32.mrf.mxu0 }
  0xc6   : > { %v422_v30 = vadd.f32 %v1321_v25, %v421_v28  ;;  %v467_v37 = vmax.f32 %v440_v32, 0.0 }
  0xc8   : > { %v460_v31 = vmax.f32 %v422_v30, 0.0 }
  0xca   : > { %v475_v33 = vpack.c.bf16 %v460_v31, %v459_v29 }
  0xcb   : > { %v441_v34 = vpop.f32.mrf.mxu2 }
  0xcc   : > { %v442_v35 = vadd.f32 %v1321_v25, %v441_v34  ;;  %555 = vmatmul.bf16.vlgmr.msra.gmra.mxu1 %v475_v33 }
  0xcd   : > { %v424_v36 = vpop.f32.mrf.mxu0 }
  0xce   : > { %v468_v38 = vmax.f32 %v442_v35, 0.0  ;;  %v425_v40 = vadd.f32 %v1321_v25, %v424_v36 }
  0xd0   : > { %v479_v39 = vpack.c.bf16 %v468_v38, %v467_v37  ;;  %v461_v43 = vmax.f32 %v425_v40, 0.0 }
  0xd2   : > { %575 = vmatmul.bf16.vlgmr.msra.gmra.mxu3 %v479_v39 }
  0xd3   : > { %v444_v41 = vpop.f32.mrf.mxu2 }
  0xd4   : > { %v445_v46 = vadd.f32 %v1321_v25, %v444_v41 }
  0xd5   : > { %v426_v42 = vpop.f32.mrf.mxu0 }
  0xd6   : > { %v427_v44 = vadd.f32 %v1321_v25, %v426_v42  ;;  %v469_v51 = vmax.f32 %v445_v46, 0.0 }
  0xd8   : > { %v462_v45 = vmax.f32 %v427_v44, 0.0 }
  0xda   : > { %v476_v47 = vpack.c.bf16 %v462_v45, %v461_v43 }
  0xdb   : > { %v446_v48 = vpop.f32.mrf.mxu2 }
  0xdc   : > { %v447_v49 = vadd.f32 %v1321_v25, %v446_v48  ;;  %560 = vmatmul.bf16.gmra.mxu1 %v476_v47 }
  0xdd   : > { %v429_v50 = vpop.f32.mrf.mxu0 }
  0xde   : > { %v470_v52 = vmax.f32 %v447_v49, 0.0  ;;  %v430_v54 = vadd.f32 %v1321_v25, %v429_v50 }
  0xe0   : > { %v480_v53 = vpack.c.bf16 %v470_v52, %v469_v51  ;;  %v463_v57 = vmax.f32 %v430_v54, 0.0 }
  0xe2   : > { %580 = vmatmul.bf16.gmra.mxu3 %v480_v53 }
  0xe3   : > { %v449_v55 = vpop.f32.mrf.mxu2 }
  0xe4   : > { %v450_v60 = vadd.f32 %v1321_v25, %v449_v55 }
  0xe5   : > { %v431_v56 = vpop.f32.mrf.mxu0 }
  0xe6   : > { %v432_v58 = vadd.f32 %v1321_v25, %v431_v56  ;;  %v471_v1 = vmax.f32 %v450_v60, 0.0 }
  0xe8   : > { %v464_v59 = vmax.f32 %v432_v58, 0.0 }
  0xea   : > { %v477_v61 = vpack.c.bf16 %v464_v59, %v463_v57 }
  0xeb   : > { %v451_v62 = vpop.f32.mrf.mxu2 }
  0xec   : > { %v452_v63 = vadd.f32 %v1321_v25, %v451_v62  ;;  %565 = vmatmul.bf16.gmra.mxu1 %v477_v61 }
  0xed   : > { %v434_v0 = vpop.f32.mrf.mxu0 }
  0xee   : > { %v472_v2 = vmax.f32 %v452_v63, 0.0  ;;  %v435_v4 = vadd.f32 %v1321_v25, %v434_v0 }
  0xf0   : > { %v481_v3 = vpack.c.bf16 %v472_v2, %v471_v1  ;;  %v465_v7 = vmax.f32 %v435_v4, 0.0 }
  0xf2   : > { %585 = vmatmul.bf16.gmra.mxu3 %v481_v3 }
  0xf3   : > { %v454_v5 = vpop.f32.mrf.mxu2 }
  0xf4   : > { %v455_v10 = vadd.f32 %v1321_v25, %v454_v5 }
  0xf5   : > { %v436_v6 = vpop.f32.mrf.mxu0 }
  0xf6   : > { %v437_v8 = vadd.f32 %v1321_v25, %v436_v6  ;;  %v473_v14 = vmax.f32 %v455_v10, 0.0 }
  0xf8   : > { %v466_v9 = vmax.f32 %v437_v8, 0.0 }
  0xfa   : > { %v478_v11 = vpack.c.bf16 %v466_v9, %v465_v7 }
  0xfb   : > { %v456_v12 = vpop.f32.mrf.mxu2 }
  0xfc   : > { %v457_v13 = vadd.f32 %v1321_v25, %v456_v12  ;;  %570 = vmatmul.bf16.gmra.mxu1 %v478_v11 }
  0xfe   : > { %v474_v15 = vmax.f32 %v457_v13, 0.0 }
 0x100   : > { %v482_v16 = vpack.c.bf16 %v474_v15, %v473_v14 }
 0x102   : > { %590 = vmatmul.bf16.gmra.mxu3 %v482_v16 }
 0x149   : > { %v556_v17 = vpop.f32.mrf.mxu1 }
 0x151   : > { %v558_v18 = vpop.f32.mrf.mxu1 }
 0x152   : > { %v1166_v19 = vpack.c.bf16 %v558_v18, %v556_v17 }
 0x154   : > { %1167 = vst [vmem:[#allocation2 + $0x30] sm:$0xff] %v1166_v19  }
 0x155   : > { %v576_v20 = vpop.f32.mrf.mxu3 }
 0x159   : > { %v561_v21 = vpop.f32.mrf.mxu1 }
 0x15d   : > { %v578_v22 = vpop.f32.mrf.mxu3 }
 0x15e   : > { %v1186_v23 = vpack.c.bf16 %v578_v22, %v576_v20 }
 0x160   : > { %1206 = vst [vmem:[#allocation2 + $0x8] sm:$0xff] %v1186_v23  }
 0x161   : > { %v563_v24 = vpop.f32.mrf.mxu1 }
 0x162   : > { %v1171_v26 = vpack.c.bf16 %v563_v24, %v561_v21 }
 0x164   : > { %1203 = vst [vmem:[#allocation2] sm:$0xff] %v1171_v26  }
 0x165   : > { %v581_v27 = vpop.f32.mrf.mxu3 }
 0x169   : > { %v566_v28 = vpop.f32.mrf.mxu1 }
 0x16d   : > { %v583_v25 = vpop.f32.mrf.mxu3 }
 0x16e   : > { %v1191_v29 = vpack.c.bf16 %v583_v25, %v581_v27 }
 0x170   : > { %1207 = vst [vmem:[#allocation2 + $0x20] sm:$0xff] %v1191_v29  }
 0x171   : > { %v568_v30 = vpop.f32.mrf.mxu1 }
 0x172   : > { %v1176_v31 = vpack.c.bf16 %v568_v30, %v566_v28 }
 0x174   : > { %1204 = vst [vmem:[#allocation2 + $0x18] sm:$0xff] %v1176_v31  }
 0x175   : > { %v586_v32 = vpop.f32.mrf.mxu3 }
 0x179   : > { %v571_v33 = vpop.f32.mrf.mxu1 }
 0x17d   : > { %v588_v34 = vpop.f32.mrf.mxu3 }
 0x17e   : > { %v1196_v35 = vpack.c.bf16 %v588_v34, %v586_v32 }
 0x180   : > { %1208 = vst [vmem:[#allocation2 + $0x28] sm:$0xff] %v1196_v35  }
 0x181   : > { %v573_v36 = vpop.f32.mrf.mxu1 }
 0x182   : > { %v1181_v37 = vpack.c.bf16 %v573_v36, %v571_v33 }
 0x184   : > { %1205 = vst [vmem:[#allocation2 + $0x10] sm:$0xff] %v1181_v37  }
 0x185   : > { %v591_v38 = vpop.f32.mrf.mxu3 }
 0x18d   : > { %v593_v39 = vpop.f32.mrf.mxu3 }
 0x18e   : > { %v1201_v40 = vpack.c.bf16 %v593_v39, %v591_v38 }
 0x190   : > { %1209 = vst [vmem:[#allocation2 + $0x38] sm:$0xff] %v1201_v40  }
 0x191 PF: > { %p1054_p8 = scmp.ne.s32.totalorder %s1467_s18, 1 }
 0x193   : > { %633 = sbr.rel (%p1054_p8) target bundleno = 601 (0x259), region = 60 }
 0x198   : > { %v1162_v41 = vld [vmem:[#allocation2 + $0x38] sm:$0xff]  ;;  %v1161_v42 = vld [vmem:[#allocation2 + $0x28] sm:$0xff]  ;;  %v1160_v43 = vld [vmem:[#allocation2 + $0x20] sm:$0xff] }
 0x199   : > { %770 = vmatpush.bf16.msra.mxu0 %v1162_v41  ;;  %1226 = vmatpush.bf16.msra.mxu1 %v1162_v41  ;;  %v1159_v44 = vld [vmem:[#allocation2 + $0x8] sm:$0xff]  ;;  %v1158_v45 = vld [vmem:[#allocation2 + $0x10] sm:$0xff]  ;;  %v1157_v46 = vld [vmem:[#allocation2 + $0x18] sm:$0xff] }
 0x19a   : > { %1227 = vmatpush.bf16.msra.mxu2 %v1162_v41  ;;  %1228 = vmatpush.bf16.msra.mxu3 %v1162_v41  ;;  %v1156_v47 = vld [vmem:[#allocation2] sm:$0xff]  ;;  %v1155_v48 = vld [vmem:[#allocation2 + $0x30] sm:$0xff]  ;;  %v1148_v53 = vld [vmem:[#allocation3 + $0x8] sm:$0xff] }
 0x19b   : > { %v1147_v49 = vld [vmem:[#allocation3] sm:$0xff]  ;;  %v1149_v50 = vld [vmem:[#allocation3 + $0x10] sm:$0xff]  ;;  %v1150_v54 = vld [vmem:[#allocation3 + $0x18] sm:$0xff] }
 0x19c   : > { %v1151_v51 = vld [vmem:[#allocation3 + $0x20] sm:$0xff]  ;;  %v1153_v52 = vld [vmem:[#allocation3 + $0x30] sm:$0xff]  ;;  %v1152_v55 = vld [vmem:[#allocation3 + $0x28] sm:$0xff] }
 0x19d   : > { %771 = vmatpush.bf16.msra.mxu0 %v1161_v42  ;;  %1229 = vmatpush.bf16.msra.mxu1 %v1161_v42  ;;  %v1154_v56 = vld [vmem:[#allocation3 + $0x38] sm:$0xff]  ;;  %v1322_v57 = vld [vmem:[%s1609_s4] ss:$0 sm:$0xff] }
 0x19e   : > { %1230 = vmatpush.bf16.msra.mxu2 %v1161_v42  ;;  %1231 = vmatpush.bf16.msra.mxu3 %v1161_v42 }
 0x1a1   : > { %772 = vmatpush.bf16.msra.mxu0 %v1160_v43  ;;  %1232 = vmatpush.bf16.msra.mxu1 %v1160_v43 }
 0x1a2   : > { %1233 = vmatpush.bf16.msra.mxu2 %v1160_v43  ;;  %1234 = vmatpush.bf16.msra.mxu3 %v1160_v43 }
 0x1a5   : > { %773 = vmatpush.bf16.msra.mxu0 %v1159_v44  ;;  %1235 = vmatpush.bf16.msra.mxu1 %v1159_v44 }
 0x1a6   : > { %1236 = vmatpush.bf16.msra.mxu2 %v1159_v44  ;;  %1237 = vmatpush.bf16.msra.mxu3 %v1159_v44 }
 0x1a9   : > { %774 = vmatpush.bf16.msra.mxu0 %v1158_v45  ;;  %1238 = vmatpush.bf16.msra.mxu1 %v1158_v45 }
 0x1aa   : > { %1239 = vmatpush.bf16.msra.mxu2 %v1158_v45  ;;  %1240 = vmatpush.bf16.msra.mxu3 %v1158_v45 }
 0x1ad   : > { %775 = vmatpush.bf16.msra.mxu0 %v1157_v46  ;;  %1241 = vmatpush.bf16.msra.mxu1 %v1157_v46 }
 0x1ae   : > { %1242 = vmatpush.bf16.msra.mxu2 %v1157_v46  ;;  %1243 = vmatpush.bf16.msra.mxu3 %v1157_v46 }
 0x1b1   : > { %776 = vmatpush.bf16.msra.mxu0 %v1156_v47  ;;  %1244 = vmatpush.bf16.msra.mxu1 %v1156_v47 }
 0x1b2   : > { %1245 = vmatpush.bf16.msra.mxu2 %v1156_v47  ;;  %1246 = vmatpush.bf16.msra.mxu3 %v1156_v47 }
 0x1b5   : > { %777 = vmatpush.bf16.msra.mxu0 %v1155_v48  ;;  %1247 = vmatpush.bf16.msra.mxu1 %v1155_v48 }
 0x1b6   : > { %1248 = vmatpush.bf16.msra.mxu2 %v1155_v48  ;;  %1249 = vmatpush.bf16.msra.mxu3 %v1155_v48 }
 0x1b8   : > { %778 = vmatmul.bf16.vlgmr.msra.gmra.mxu0 %v1147_v49  ;;  %788 = vmatmul.bf16.vlgmr.msra.gmra.mxu1 %v1149_v50 }
 0x1b9   : > { %798 = vmatmul.bf16.vlgmr.msra.gmra.mxu2 %v1151_v51  ;;  %808 = vmatmul.bf16.vlgmr.msra.gmra.mxu3 %v1153_v52 }
 0x1c8   : > { %783 = vmatmul.bf16.gmra.mxu0 %v1148_v53  ;;  %793 = vmatmul.bf16.gmra.mxu1 %v1150_v54 }
 0x1c9   : > { %803 = vmatmul.bf16.gmra.mxu2 %v1152_v55  ;;  %813 = vmatmul.bf16.gmra.mxu3 %v1154_v56 }
 0x235   : > { %v779_v58 = vpop.f32.mrf.mxu0  ;;  %v789_v59 = vpop.f32.mrf.mxu1 }
 0x236   : > { %v780_v60 = vadd.f32 %v1322_v57, %v779_v58  ;;  %v790_v61 = vadd.f32 %v1322_v57, %v789_v59 }
 0x238   : > { %819 = vst [vmem:[#allocation9] sm:$0xff] %v780_v60 }
 0x239   : > { %823 = vst [vmem:[#allocation9 + $0x20] sm:$0xff] %v790_v61 }
 0x23c   : > { %v799_v62 = vpop.f32.mrf.mxu2  ;;  %v809_v63 = vpop.f32.mrf.mxu3 }
 0x23d   : > { %v800_v0 = vadd.f32 %v1322_v57, %v799_v62  ;;  %v810_v1 = vadd.f32 %v1322_v57, %v809_v63  ;;  %v781_v2 = vpop.f32.mrf.mxu0  ;;  %v791_v3 = vpop.f32.mrf.mxu1 }
 0x23e   : > { %v782_v4 = vadd.f32 %v1322_v57, %v781_v2  ;;  %v792_v5 = vadd.f32 %v1322_v57, %v791_v3 }
 0x23f   : > { %827 = vst [vmem:[#allocation9 + $0x40] sm:$0xff] %v800_v0 }
 0x240   : > { %831 = vst [vmem:[#allocation9 + $0x60] sm:$0xff] %v810_v1 }
 0x241   : > { %820 = vst [vmem:[#allocation9 + $0x8] sm:$0xff] %v782_v4 }
 0x242   : > { %824 = vst [vmem:[#allocation9 + $0x28] sm:$0xff] %v792_v5 }
 0x244   : > { %v801_v6 = vpop.f32.mrf.mxu2  ;;  %v811_v7 = vpop.f32.mrf.mxu3 }
 0x245   : > { %v802_v8 = vadd.f32 %v1322_v57, %v801_v6  ;;  %v812_v9 = vadd.f32 %v1322_v57, %v811_v7  ;;  %v784_v10 = vpop.f32.mrf.mxu0  ;;  %v794_v11 = vpop.f32.mrf.mxu1 }
 0x246   : > { %v785_v12 = vadd.f32 %v1322_v57, %v784_v10  ;;  %v795_v13 = vadd.f32 %v1322_v57, %v794_v11 }
 0x247   : > { %828 = vst [vmem:[#allocation9 + $0x48] sm:$0xff] %v802_v8 }
 0x248   : > { %832 = vst [vmem:[#allocation9 + $0x68] sm:$0xff] %v812_v9 }
 0x249   : > { %821 = vst [vmem:[#allocation9 + $0x10] sm:$0xff] %v785_v12 }
 0x24a   : > { %825 = vst [vmem:[#allocation9 + $0x30] sm:$0xff] %v795_v13 }
 0x24c   : > { %v804_v14 = vpop.f32.mrf.mxu2  ;;  %v814_v15 = vpop.f32.mrf.mxu3 }
 0x24d   : > { %v805_v16 = vadd.f32 %v1322_v57, %v804_v14  ;;  %v815_v17 = vadd.f32 %v1322_v57, %v814_v15  ;;  %v786_v18 = vpop.f32.mrf.mxu0  ;;  %v796_v19 = vpop.f32.mrf.mxu1 }
 0x24e   : > { %v787_v20 = vadd.f32 %v1322_v57, %v786_v18  ;;  %v797_v21 = vadd.f32 %v1322_v57, %v796_v19 }
 0x24f   : > { %829 = vst [vmem:[#allocation9 + $0x50] sm:$0xff] %v805_v16 }
 0x250   : > { %833 = vst [vmem:[#allocation9 + $0x70] sm:$0xff] %v815_v17 }
 0x251   : > { %822 = vst [vmem:[#allocation9 + $0x18] sm:$0xff] %v787_v20 }
 0x252   : > { %826 = vst [vmem:[#allocation9 + $0x38] sm:$0xff] %v797_v21 }
 0x254   : > { %v806_v22 = vpop.f32.mrf.mxu2  ;;  %v816_v23 = vpop.f32.mrf.mxu3 }
 0x255   : > { %v807_v24 = vadd.f32 %v1322_v57, %v806_v22  ;;  %v817_v26 = vadd.f32 %v1322_v57, %v816_v23 }
 0x257   : > { %830 = vst [vmem:[#allocation9 + $0x58] sm:$0xff] %v807_v24 }
 0x258   : > { %834 = vst [vmem:[#allocation9 + $0x78] sm:$0xff] %v817_v26 }
 0x259 PF: > { %p1286_p9 = scmp.eq.s32.totalorder %s947_s21, 1  ;;  %s851_s29 = sshll.u32 %s1610_s5, 4  ;;  %s852_s29 = int_to_ptr.hbm [resolvable:$true] %s851_s29 }
 0x25a   : > { %s1482_s30 = smov [#allocation9]   ;;  %s1483_s8 = smov 128  }
 0x25b   : > { %s849_s7 = sshll.u32 %s1482_s30, 4  ;;  %s1484_s9 = smov 8   ;;  %s850_s7 = int_to_ptr.vmem [resolvable:$true] %s849_s7 }
 0x25c   : > { %1263 = dma.vmem_to_hbm [thread:$0]  (%p1286_p9), %s850_s7, 2048, %s852_s29, [#allocation5], %s1483_s8, %s1483_s8, %s1484_s9  }
 0x25d PF: > { %p1287_p10 = scmp.ge.s32.totalorder %s1475_s20, 2  ;;  %p1288_p11 = scmp.eq.s32.totalorder %s948_s22, 1 }
 0x25f   : > { %p1277_p12 = pnand %p1288_p11, %p1287_p10 }
 0x261   : > { %p1278_p13 = pneg %p1277_p12 }
 0x263   : > { %1462 = dma.done.wait (%p1278_p13), [#allocation5], 2048  }
 0x264   : > { %1464 = vsyncadd (%p1278_p13), [#allocation5], 4294965248  ;;  %s20_s20 = sadd.s32 1, %s1475_s20   ;;  %s1614_s18 = smov %s1471_s19 }
 0x265   : > { %p17_p0 = scmp.ge.s32.totalorder %s20_s20, 4   ;;  %s1615_s19 = smov %s1617_s6 }
 0x267   :  { %19 = sbr.rel (!%p17_p0) target bundleno = 5 (0x5), region = 96 }
 0x26c   :  { %873 = vsyncpa [#allocation4], 1 }
 0x26d   :  { %875 = vsyncpa [#allocation4 + $0x1], 1 }
 0x26e   :  { %876 = vsyncpa [#allocation7], 1 }
 0x26f   :  { %877 = vsyncpa [#allocation5], 1 }
 0x270   :  { %879 = vsyncpa [#allocation5 + $0x1], 1 }

</bundles_post_ra>
